<compile_context>
chip_gen: v5e
topology: v5e:2x2
jax: 0.10.0
libtpu: 0.0.40
codegen_flags: <defaults>
</compile_context>

<pallas_src>
import functools

import jax
import jax.numpy as jnp
from jax.experimental import pallas as pl
from jax.experimental.pallas import tpu as pltpu

_EPS = 1e-8
_LANE = 128
_TP_MAX = 1024  # lane-rows per grid step (~13 MiB double-buffered f32 inputs)


def _loss_partials_kernel(gt_s_ref, pred_s_ref, ign_ref, gt_g_ref, pred_g_ref,
                          out_ref, *, tp, sub, valid_px, needs_mask):
    """Accumulates per-pixel loss terms into the resident per-b output block.

    out_ref (VMEM, f32[1, 5, sub, 128]) planes (accumulated over the p axis):
      [0] gt_score
      [1] gt * log(p + eps)                  with p = pred_score*(1-ignored)
      [2] (1-gt) * log(1 - p + eps)
      [3] iou loss map
      [4] angle loss map
    """
    p = pl.program_id(1)

    @pl.when(p == 0)
    def _():
        out_ref[...] = jnp.zeros_like(out_ref)

    f32 = jnp.float32
    gt = gt_s_ref[0].astype(f32)          # (tp, 128)
    pred = pred_s_ref[0].astype(f32)
    ign = ign_ref[0].astype(f32)
    ps = pred * (1.0 - ign)

    d1g = gt_g_ref[0].astype(f32)
    d2g = gt_g_ref[1].astype(f32)
    d3g = gt_g_ref[2].astype(f32)
    d4g = gt_g_ref[3].astype(f32)
    ag = gt_g_ref[4].astype(f32)
    d1p = pred_g_ref[0].astype(f32)
    d2p = pred_g_ref[1].astype(f32)
    d3p = pred_g_ref[2].astype(f32)
    d4p = pred_g_ref[3].astype(f32)
    ap = pred_g_ref[4].astype(f32)

    t0 = gt
    t1 = gt * jnp.log(ps + _EPS)
    t2 = (1.0 - gt) * jnp.log(1.0 - ps + _EPS)

    area_gt = (d1g + d2g) * (d3g + d4g)
    area_pr = (d1p + d2p) * (d3p + d4p)
    w_union = jnp.minimum(d3g, d3p) + jnp.minimum(d4g, d4p)
    h_union = jnp.minimum(d1g, d1p) + jnp.minimum(d2g, d2p)
    area_inter = w_union * h_union
    area_union = area_gt + area_pr - area_inter
    t3 = -jnp.log((area_inter + 1.0)
                  * pl.reciprocal(area_union + 1.0, approx=True))
    t4 = 1.0 - jnp.cos(ap - ag)

    terms = (t0, t1, t2, t3, t4)
    if needs_mask:
        # Tail tile: zero out contributions from rows/lanes past the real
        # pixel count (block-boundary VMEM contents are unspecified).
        row = jax.lax.broadcasted_iota(jnp.int32, (tp, _LANE), 0)
        lane = jax.lax.broadcasted_iota(jnp.int32, (tp, _LANE), 1)
        gpix = (p * tp + row) * _LANE + lane
        mask = gpix < valid_px
        zero = jnp.zeros((tp, _LANE), f32)
        terms = tuple(jnp.where(mask, t, zero) for t in terms)

    for i, t in enumerate(terms):
        # Partial (sublane-aligned, XLU-free) reduce before the accumulate:
        # keeps accumulator traffic at 5*(sub,128) per step.
        r = t.reshape(tp // sub, sub, _LANE).sum(axis=0)
        out_ref[0, i] += r


@functools.partial(jax.jit, static_argnames=("weight_angle",))
def east_loss_pallas(gt_score, pred_score, gt_geo, pred_geo, ignored_map,
                     weight_angle=10.0):
    B, _, H, W = gt_score.shape
    HW = H * W

    P_rows = (HW + _LANE - 1) // _LANE          # lane rows (last may be partial)
    lane_pad = P_rows * _LANE - HW
    tp = P_rows if P_rows <= _TP_MAX else _TP_MAX
    grid_p = (P_rows + tp - 1) // tp
    sub = 8 if tp % 8 == 0 else tp              # partial-reduce target rows
    needs_mask = (lane_pad != 0) or (P_rows % tp != 0)

    def prep_score(x):  # (B,1,H,W) -> (B, P_rows, 128), transpose-free
        x = x.reshape(B, HW)
        if lane_pad:
            # TODO(synk): only hit when H*W % 128 != 0; this is the one
            # remaining HBM copy (needed to make the lane reshape legal).
            x = jnp.pad(x, ((0, 0), (0, lane_pad)))
        return x.reshape(B, P_rows, _LANE)

    def prep_geo(x):    # (B,5,H,W) -> (B*5, P_rows, 128), transpose-free
        x = x.reshape(B, 5, HW)
        if lane_pad:
            x = jnp.pad(x, ((0, 0), (0, 0), (0, lane_pad)))
        return x.reshape(B * 5, P_rows, _LANE)

    gt_s = prep_score(gt_score)
    pred_s = prep_score(pred_score)
    ign = prep_score(ignored_map)
    gt_g = prep_geo(gt_geo)
    pred_g = prep_geo(pred_geo)

    kernel = functools.partial(_loss_partials_kernel, tp=tp, sub=sub,
                               valid_px=HW, needs_mask=needs_mask)

    per_b = pl.pallas_call(
        kernel,
        out_shape=jax.ShapeDtypeStruct((B, 5, sub, _LANE), jnp.float32),
        grid_spec=pltpu.PrefetchScalarGridSpec(
            num_scalar_prefetch=0,
            grid=(B, grid_p),
            in_specs=[
                pl.BlockSpec((1, tp, _LANE), lambda b, p: (b, p, 0)),
                pl.BlockSpec((1, tp, _LANE), lambda b, p: (b, p, 0)),
                pl.BlockSpec((1, tp, _LANE), lambda b, p: (b, p, 0)),
                pl.BlockSpec((5, tp, _LANE), lambda b, p: (b, p, 0)),
                pl.BlockSpec((5, tp, _LANE), lambda b, p: (b, p, 0)),
            ],
            out_specs=pl.BlockSpec((1, 5, sub, _LANE),
                                   lambda b, p: (b, 0, 0, 0)),
        ),
        compiler_params=pltpu.CompilerParams(
            dimension_semantics=("parallel", "arbitrary"),
            vmem_limit_bytes=32 * 1024 * 1024),
    )(gt_s, pred_s, ign, gt_g, pred_g)

    partials = jnp.sum(per_b, axis=(0, 2, 3))   # (5,)

    n = jnp.float32(B * HW)  # real pixel count (score map has 1 channel)
    sum_gt = partials[0]
    s_log_p = partials[1]
    s_log_1mp = partials[2]
    s_iou = partials[3]
    s_ang = partials[4]

    beta = 1.0 - sum_gt / n
    classify_loss = -(beta * s_log_p + (1.0 - beta) * s_log_1mp) / n
    iou_loss = s_iou / n
    angle_loss = s_ang / n
    geo_loss = weight_angle * angle_loss + iou_loss
    full_loss = geo_loss + classify_loss

    # Early-exit branch of the PyTorch module: sum(pred_score + pred_geo) * 0.
    # TODO(synk): returning a constant 0.0 here does not propagate NaN/Inf
    # from the predictions in the empty-ground-truth branch, and the component
    # losses are not gated (kept for perf; acceptable for a training loss).
    loss = jnp.where(sum_gt < 1.0, jnp.float32(0.0), full_loss)
    return loss, classify_loss, angle_loss, iou_loss


def east_loss_ref(gt_score, pred_score, gt_geo, pred_geo, ignored_map,
                  weight_angle=10.0):
    """Pure-JAX reference (mirrors the PyTorch semantics)."""
    if float(jnp.sum(gt_score)) < 1:
        return jnp.sum(pred_score + pred_geo) * 0.0
    p = pred_score * (1.0 - ignored_map)
    beta = 1.0 - jnp.mean(gt_score)
    classify_loss = jnp.mean(
        -beta * gt_score * jnp.log(p + _EPS)
        - (1.0 - beta) * (1.0 - gt_score) * jnp.log(1.0 - p + _EPS))
    d1g, d2g, d3g, d4g, ag = [gt_geo[:, i:i + 1] for i in range(5)]
    d1p, d2p, d3p, d4p, ap = [pred_geo[:, i:i + 1] for i in range(5)]
    area_gt = (d1g + d2g) * (d3g + d4g)
    area_pr = (d1p + d2p) * (d3p + d4p)
    w_union = jnp.minimum(d3g, d3p) + jnp.minimum(d4g, d4p)
    h_union = jnp.minimum(d1g, d1p) + jnp.minimum(d2g, d2p)
    area_inter = w_union * h_union
    area_union = area_gt + area_pr - area_inter
    iou_loss = jnp.mean(-jnp.log((area_inter + 1.0) / (area_union + 1.0)))
    angle_loss = jnp.mean(1.0 - jnp.cos(ap - ag))
    return weight_angle * angle_loss + iou_loss + classify_loss


if __name__ == "__main__":
    B, H, W = 2, 16, 16
    key = jax.random.PRNGKey(0)
    k1, k2, k3, k4, k5 = jax.random.split(key, 5)

    gt_score = (jax.random.uniform(k1, (B, 1, H, W)) > 0.7).astype(jnp.float32)
    pred_score = jax.nn.sigmoid(jax.random.normal(k2, (B, 1, H, W)))
    gt_geo = jnp.abs(jax.random.normal(k3, (B, 5, H, W))) * 4.0
    gt_geo = gt_geo.at[:, 4].set(jax.random.normal(k3, (B, H, W)) * 0.3)
    pred_geo = jnp.abs(jax.random.normal(k4, (B, 5, H, W))) * 4.0
    pred_geo = pred_geo.at[:, 4].set(jax.random.normal(k4, (B, H, W)) * 0.3)
    ignored_map = (jax.random.uniform(k5, (B, 1, H, W)) > 0.9).astype(jnp.float32)

    loss, cls_l, ang_l, iou_l = east_loss_pallas(
        gt_score, pred_score, gt_geo, pred_geo, ignored_map, weight_angle=10.0)
    jax.block_until_ready(loss)

    # mirrors the module's print statement
    print('classify loss is {:.8f}, angle loss is {:.8f}, iou loss is {:.8f}'.format(
        float(cls_l), float(ang_l), float(iou_l)))

    ref = east_loss_ref(gt_score, pred_score, gt_geo, pred_geo, ignored_map, 10.0)
    assert abs(float(loss) - float(ref)) < 1e-3 * max(1.0, abs(float(ref))), \
        (float(loss), float(ref))
    print("KERNEL_OK")
</pallas_src>

<mosaic_0001>
module attributes {stable_mosaic.version = 11 : i64} {
  func.func @_loss_partials_kernel(%arg0: i32, %arg1: i32, %arg2: memref<1x2x128xf32, #tpu.memory_space<vmem>>, %arg3: memref<1x2x128xf32, #tpu.memory_space<vmem>>, %arg4: memref<1x2x128xf32, #tpu.memory_space<vmem>>, %arg5: memref<5x2x128xf32, #tpu.memory_space<vmem>>, %arg6: memref<5x2x128xf32, #tpu.memory_space<vmem>>, %arg7: memref<1x5x2x128xf32, #tpu.memory_space<vmem>>) attributes {dimension_semantics = [#tpu.dimension_semantics<parallel>, #tpu.dimension_semantics<arbitrary>], iteration_bounds = array<i64: 2, 1>, scalar_prefetch = 0 : i64, scratch_operands = 0 : i64, tpu.core_type = #tpu.core_type<tc>, window_params = [{transform_indices = @transform_0, window_bounds = array<i64: 1, 2, 128>}, {transform_indices = @transform_1, window_bounds = array<i64: 1, 2, 128>}, {transform_indices = @transform_2, window_bounds = array<i64: 1, 2, 128>}, {transform_indices = @transform_3, window_bounds = array<i64: 5, 2, 128>}, {transform_indices = @transform_4, window_bounds = array<i64: 5, 2, 128>}, {transform_indices = @transform_5, window_bounds = array<i64: 1, 5, 2, 128>}]} {
    %c0_i32 = arith.constant 0 : i32
    %0 = arith.cmpi eq, %arg1, %c0_i32 : i32
    %1 = arith.extui %0 : i1 to i32
    %c0_i32_0 = arith.constant 0 : i32
    %2 = arith.cmpi ne, %1, %c0_i32_0 : i32
    scf.if %2 {
      %cst_88 = arith.constant 0.000000e+00 : f32
      %112 = vector.broadcast %cst_88 : f32 to vector<1x5x2x128xf32>
      %c0_89 = arith.constant 0 : index
      %c0_90 = arith.constant 0 : index
      %c0_91 = arith.constant 0 : index
      %c0_92 = arith.constant 0 : index
      %113 = vector.load %arg7[%c0_89, %c0_90, %c0_91, %c0_92] : memref<1x5x2x128xf32, #tpu.memory_space<vmem>>, vector<1x5x2x128xf32>
      tpu.vector_store %arg7[%c0_89, %c0_90, %c0_91, %c0_92], %112 {strides = array<i32>} : memref<1x5x2x128xf32, #tpu.memory_space<vmem>>, vector<1x5x2x128xf32>,
    } else {
    }
    %c0 = arith.constant 0 : index
    %c0_1 = arith.constant 0 : index
    %c0_2 = arith.constant 0 : index
    %3 = vector.load %arg2[%c0, %c0_1, %c0_2] : memref<1x2x128xf32, #tpu.memory_space<vmem>>, vector<1x2x128xf32>
    %4 = vector.shape_cast %3 : vector<1x2x128xf32> to vector<2x128xf32>
    %c0_3 = arith.constant 0 : index
    %c0_4 = arith.constant 0 : index
    %c0_5 = arith.constant 0 : index
    %5 = vector.load %arg3[%c0_3, %c0_4, %c0_5] : memref<1x2x128xf32, #tpu.memory_space<vmem>>, vector<1x2x128xf32>
    %6 = vector.shape_cast %5 : vector<1x2x128xf32> to vector<2x128xf32>
    %c0_6 = arith.constant 0 : index
    %c0_7 = arith.constant 0 : index
    %c0_8 = arith.constant 0 : index
    %7 = vector.load %arg4[%c0_6, %c0_7, %c0_8] : memref<1x2x128xf32, #tpu.memory_space<vmem>>, vector<1x2x128xf32>
    %8 = vector.shape_cast %7 : vector<1x2x128xf32> to vector<2x128xf32>
    %cst = arith.constant 1.000000e+00 : f32
    %9 = vector.broadcast %cst : f32 to vector<2x128xf32>
    %10 = arith.subf %9, %8 : vector<2x128xf32>
    %11 = arith.mulf %6, %10 : vector<2x128xf32>
    %c0_9 = arith.constant 0 : index
    %c0_10 = arith.constant 0 : index
    %c0_11 = arith.constant 0 : index
    %12 = vector.load %arg5[%c0_9, %c0_10, %c0_11] : memref<5x2x128xf32, #tpu.memory_space<vmem>>, vector<1x2x128xf32>
    %13 = vector.shape_cast %12 : vector<1x2x128xf32> to vector<2x128xf32>
    %c1 = arith.constant 1 : index
    %c0_12 = arith.constant 0 : index
    %c0_13 = arith.constant 0 : index
    %14 = vector.load %arg5[%c1, %c0_12, %c0_13] : memref<5x2x128xf32, #tpu.memory_space<vmem>>, vector<1x2x128xf32>
    %15 = vector.shape_cast %14 : vector<1x2x128xf32> to vector<2x128xf32>
    %c2 = arith.constant 2 : index
    %c0_14 = arith.constant 0 : index
    %c0_15 = arith.constant 0 : index
    %16 = vector.load %arg5[%c2, %c0_14, %c0_15] : memref<5x2x128xf32, #tpu.memory_space<vmem>>, vector<1x2x128xf32>
    %17 = vector.shape_cast %16 : vector<1x2x128xf32> to vector<2x128xf32>
    %c3 = arith.constant 3 : index
    %c0_16 = arith.constant 0 : index
    %c0_17 = arith.constant 0 : index
    %18 = vector.load %arg5[%c3, %c0_16, %c0_17] : memref<5x2x128xf32, #tpu.memory_space<vmem>>, vector<1x2x128xf32>
    %19 = vector.shape_cast %18 : vector<1x2x128xf32> to vector<2x128xf32>
    %c4 = arith.constant 4 : index
    %c0_18 = arith.constant 0 : index
    %c0_19 = arith.constant 0 : index
    %20 = vector.load %arg5[%c4, %c0_18, %c0_19] : memref<5x2x128xf32, #tpu.memory_space<vmem>>, vector<1x2x128xf32>
    %21 = vector.shape_cast %20 : vector<1x2x128xf32> to vector<2x128xf32>
    %c0_20 = arith.constant 0 : index
    %c0_21 = arith.constant 0 : index
    %c0_22 = arith.constant 0 : index
    %22 = vector.load %arg6[%c0_20, %c0_21, %c0_22] : memref<5x2x128xf32, #tpu.memory_space<vmem>>, vector<1x2x128xf32>
    %23 = vector.shape_cast %22 : vector<1x2x128xf32> to vector<2x128xf32>
    %c1_23 = arith.constant 1 : index
    %c0_24 = arith.constant 0 : index
    %c0_25 = arith.constant 0 : index
    %24 = vector.load %arg6[%c1_23, %c0_24, %c0_25] : memref<5x2x128xf32, #tpu.memory_space<vmem>>, vector<1x2x128xf32>
    %25 = vector.shape_cast %24 : vector<1x2x128xf32> to vector<2x128xf32>
    %c2_26 = arith.constant 2 : index
    %c0_27 = arith.constant 0 : index
    %c0_28 = arith.constant 0 : index
    %26 = vector.load %arg6[%c2_26, %c0_27, %c0_28] : memref<5x2x128xf32, #tpu.memory_space<vmem>>, vector<1x2x128xf32>
    %27 = vector.shape_cast %26 : vector<1x2x128xf32> to vector<2x128xf32>
    %c3_29 = arith.constant 3 : index
    %c0_30 = arith.constant 0 : index
    %c0_31 = arith.constant 0 : index
    %28 = vector.load %arg6[%c3_29, %c0_30, %c0_31] : memref<5x2x128xf32, #tpu.memory_space<vmem>>, vector<1x2x128xf32>
    %29 = vector.shape_cast %28 : vector<1x2x128xf32> to vector<2x128xf32>
    %c4_32 = arith.constant 4 : index
    %c0_33 = arith.constant 0 : index
    %c0_34 = arith.constant 0 : index
    %30 = vector.load %arg6[%c4_32, %c0_33, %c0_34] : memref<5x2x128xf32, #tpu.memory_space<vmem>>, vector<1x2x128xf32>
    %31 = vector.shape_cast %30 : vector<1x2x128xf32> to vector<2x128xf32>
    %cst_35 = arith.constant 9.99999993E-9 : f32
    %32 = vector.broadcast %cst_35 : f32 to vector<2x128xf32>
    %33 = arith.addf %11, %32 : vector<2x128xf32>
    %34 = math.log %33 : vector<2x128xf32>
    %35 = arith.mulf %4, %34 : vector<2x128xf32>
    %cst_36 = arith.constant 1.000000e+00 : f32
    %36 = vector.broadcast %cst_36 : f32 to vector<2x128xf32>
    %37 = arith.subf %36, %4 : vector<2x128xf32>
    %cst_37 = arith.constant 1.000000e+00 : f32
    %38 = vector.broadcast %cst_37 : f32 to vector<2x128xf32>
    %39 = arith.subf %38, %11 : vector<2x128xf32>
    %cst_38 = arith.constant 9.99999993E-9 : f32
    %40 = vector.broadcast %cst_38 : f32 to vector<2x128xf32>
    %41 = arith.addf %39, %40 : vector<2x128xf32>
    %42 = math.log %41 : vector<2x128xf32>
    %43 = arith.mulf %37, %42 : vector<2x128xf32>
    %44 = arith.addf %13, %15 : vector<2x128xf32>
    %45 = arith.addf %17, %19 : vector<2x128xf32>
    %46 = arith.mulf %44, %45 : vector<2x128xf32>
    %47 = arith.addf %23, %25 : vector<2x128xf32>
    %48 = arith.addf %27, %29 : vector<2x128xf32>
    %49 = arith.mulf %47, %48 : vector<2x128xf32>
    %50 = arith.minimumf %17, %27 : vector<2x128xf32>
    %51 = arith.minimumf %19, %29 : vector<2x128xf32>
    %52 = arith.addf %50, %51 : vector<2x128xf32>
    %53 = arith.minimumf %13, %23 : vector<2x128xf32>
    %54 = arith.minimumf %15, %25 : vector<2x128xf32>
    %55 = arith.addf %53, %54 : vector<2x128xf32>
    %56 = arith.mulf %52, %55 : vector<2x128xf32>
    %57 = arith.addf %46, %49 : vector<2x128xf32>
    %58 = arith.subf %57, %56 : vector<2x128xf32>
    %cst_39 = arith.constant 1.000000e+00 : f32
    %59 = vector.broadcast %cst_39 : f32 to vector<2x128xf32>
    %60 = arith.addf %56, %59 : vector<2x128xf32>
    %cst_40 = arith.constant 1.000000e+00 : f32
    %61 = vector.broadcast %cst_40 : f32 to vector<2x128xf32>
    %62 = arith.addf %58, %61 : vector<2x128xf32>
    %63 = tpu.reciprocal %62 {approx = true} : vector<2x128xf32> -> vector<2x128xf32>
    %64 = arith.mulf %60, %63 : vector<2x128xf32>
    %65 = math.log %64 : vector<2x128xf32>
    %cst_41 = arith.constant 0.000000e+00 : f32
    %66 = vector.broadcast %cst_41 : f32 to vector<2x128xf32>
    %67 = arith.subf %66, %65 : vector<2x128xf32>
    %68 = arith.subf %31, %21 : vector<2x128xf32>
    %69 = math.cos %68 : vector<2x128xf32>
    %cst_42 = arith.constant 1.000000e+00 : f32
    %70 = vector.broadcast %cst_42 : f32 to vector<2x128xf32>
    %71 = arith.subf %70, %69 : vector<2x128xf32>
    %72 = vector.shape_cast %4 : vector<2x128xf32> to vector<1x2x128xf32>
    %cst_43 = arith.constant dense<0.000000e+00> : vector<2x128xf32>
    %73 = vector.multi_reduction <add>, %72, %cst_43 [0] : vector<1x2x128xf32> to vector<2x128xf32>
    %c0_44 = arith.constant 0 : index
    %c0_45 = arith.constant 0 : index
    %c0_46 = arith.constant 0 : index
    %c0_47 = arith.constant 0 : index
    %74 = vector.load %arg7[%c0_44, %c0_45, %c0_46, %c0_47] : memref<1x5x2x128xf32, #tpu.memory_space<vmem>>, vector<1x1x2x128xf32>
    %75 = vector.shape_cast %74 : vector<1x1x2x128xf32> to vector<2x128xf32>
    %76 = arith.addf %75, %73 : vector<2x128xf32>
    %c0_48 = arith.constant 0 : index
    %c0_49 = arith.constant 0 : index
    %c0_50 = arith.constant 0 : index
    %c0_51 = arith.constant 0 : index
    %77 = vector.load %arg7[%c0_48, %c0_49, %c0_50, %c0_51] : memref<1x5x2x128xf32, #tpu.memory_space<vmem>>, vector<1x1x2x128xf32>
    %78 = vector.shape_cast %77 : vector<1x1x2x128xf32> to vector<2x128xf32>
    %79 = vector.shape_cast %76 : vector<2x128xf32> to vector<1x1x2x128xf32>
    tpu.vector_store %arg7[%c0_48, %c0_49, %c0_50, %c0_51], %79 {strides = array<i32>} : memref<1x5x2x128xf32, #tpu.memory_space<vmem>>, vector<1x1x2x128xf32>,
    %80 = vector.shape_cast %35 : vector<2x128xf32> to vector<1x2x128xf32>
    %cst_52 = arith.constant dense<0.000000e+00> : vector<2x128xf32>
    %81 = vector.multi_reduction <add>, %80, %cst_52 [0] : vector<1x2x128xf32> to vector<2x128xf32>
    %c0_53 = arith.constant 0 : index
    %c1_54 = arith.constant 1 : index
    %c0_55 = arith.constant 0 : index
    %c0_56 = arith.constant 0 : index
    %82 = vector.load %arg7[%c0_53, %c1_54, %c0_55, %c0_56] : memref<1x5x2x128xf32, #tpu.memory_space<vmem>>, vector<1x1x2x128xf32>
    %83 = vector.shape_cast %82 : vector<1x1x2x128xf32> to vector<2x128xf32>
    %84 = arith.addf %83, %81 : vector<2x128xf32>
    %c0_57 = arith.constant 0 : index
    %c1_58 = arith.constant 1 : index
    %c0_59 = arith.constant 0 : index
    %c0_60 = arith.constant 0 : index
    %85 = vector.load %arg7[%c0_57, %c1_58, %c0_59, %c0_60] : memref<1x5x2x128xf32, #tpu.memory_space<vmem>>, vector<1x1x2x128xf32>
    %86 = vector.shape_cast %85 : vector<1x1x2x128xf32> to vector<2x128xf32>
    %87 = vector.shape_cast %84 : vector<2x128xf32> to vector<1x1x2x128xf32>
    tpu.vector_store %arg7[%c0_57, %c1_58, %c0_59, %c0_60], %87 {strides = array<i32>} : memref<1x5x2x128xf32, #tpu.memory_space<vmem>>, vector<1x1x2x128xf32>,
    %88 = vector.shape_cast %43 : vector<2x128xf32> to vector<1x2x128xf32>
    %cst_61 = arith.constant dense<0.000000e+00> : vector<2x128xf32>
    %89 = vector.multi_reduction <add>, %88, %cst_61 [0] : vector<1x2x128xf32> to vector<2x128xf32>
    %c0_62 = arith.constant 0 : index
    %c2_63 = arith.constant 2 : index
    %c0_64 = arith.constant 0 : index
    %c0_65 = arith.constant 0 : index
    %90 = vector.load %arg7[%c0_62, %c2_63, %c0_64, %c0_65] : memref<1x5x2x128xf32, #tpu.memory_space<vmem>>, vector<1x1x2x128xf32>
    %91 = vector.shape_cast %90 : vector<1x1x2x128xf32> to vector<2x128xf32>
    %92 = arith.addf %91, %89 : vector<2x128xf32>
    %c0_66 = arith.constant 0 : index
    %c2_67 = arith.constant 2 : index
    %c0_68 = arith.constant 0 : index
    %c0_69 = arith.constant 0 : index
    %93 = vector.load %arg7[%c0_66, %c2_67, %c0_68, %c0_69] : memref<1x5x2x128xf32, #tpu.memory_space<vmem>>, vector<1x1x2x128xf32>
    %94 = vector.shape_cast %93 : vector<1x1x2x128xf32> to vector<2x128xf32>
    %95 = vector.shape_cast %92 : vector<2x128xf32> to vector<1x1x2x128xf32>
    tpu.vector_store %arg7[%c0_66, %c2_67, %c0_68, %c0_69], %95 {strides = array<i32>} : memref<1x5x2x128xf32, #tpu.memory_space<vmem>>, vector<1x1x2x128xf32>,
    %96 = vector.shape_cast %67 : vector<2x128xf32> to vector<1x2x128xf32>
    %cst_70 = arith.constant dense<0.000000e+00> : vector<2x128xf32>
    %97 = vector.multi_reduction <add>, %96, %cst_70 [0] : vector<1x2x128xf32> to vector<2x128xf32>
    %c0_71 = arith.constant 0 : index
    %c3_72 = arith.constant 3 : index
    %c0_73 = arith.constant 0 : index
    %c0_74 = arith.constant 0 : index
    %98 = vector.load %arg7[%c0_71, %c3_72, %c0_73, %c0_74] : memref<1x5x2x128xf32, #tpu.memory_space<vmem>>, vector<1x1x2x128xf32>
    %99 = vector.shape_cast %98 : vector<1x1x2x128xf32> to vector<2x128xf32>
    %100 = arith.addf %99, %97 : vector<2x128xf32>
    %c0_75 = arith.constant 0 : index
    %c3_76 = arith.constant 3 : index
    %c0_77 = arith.constant 0 : index
    %c0_78 = arith.constant 0 : index
    %101 = vector.load %arg7[%c0_75, %c3_76, %c0_77, %c0_78] : memref<1x5x2x128xf32, #tpu.memory_space<vmem>>, vector<1x1x2x128xf32>
    %102 = vector.shape_cast %101 : vector<1x1x2x128xf32> to vector<2x128xf32>
    %103 = vector.shape_cast %100 : vector<2x128xf32> to vector<1x1x2x128xf32>
    tpu.vector_store %arg7[%c0_75, %c3_76, %c0_77, %c0_78], %103 {strides = array<i32>} : memref<1x5x2x128xf32, #tpu.memory_space<vmem>>, vector<1x1x2x128xf32>,
    %104 = vector.shape_cast %71 : vector<2x128xf32> to vector<1x2x128xf32>
    %cst_79 = arith.constant dense<0.000000e+00> : vector<2x128xf32>
    %105 = vector.multi_reduction <add>, %104, %cst_79 [0] : vector<1x2x128xf32> to vector<2x128xf32>
    %c0_80 = arith.constant 0 : index
    %c4_81 = arith.constant 4 : index
    %c0_82 = arith.constant 0 : index
    %c0_83 = arith.constant 0 : index
    %106 = vector.load %arg7[%c0_80, %c4_81, %c0_82, %c0_83] : memref<1x5x2x128xf32, #tpu.memory_space<vmem>>, vector<1x1x2x128xf32>
    %107 = vector.shape_cast %106 : vector<1x1x2x128xf32> to vector<2x128xf32>
    %108 = arith.addf %107, %105 : vector<2x128xf32>
    %c0_84 = arith.constant 0 : index
    %c4_85 = arith.constant 4 : index
    %c0_86 = arith.constant 0 : index
    %c0_87 = arith.constant 0 : index
    %109 = vector.load %arg7[%c0_84, %c4_85, %c0_86, %c0_87] : memref<1x5x2x128xf32, #tpu.memory_space<vmem>>, vector<1x1x2x128xf32>
    %110 = vector.shape_cast %109 : vector<1x1x2x128xf32> to vector<2x128xf32>
    %111 = vector.shape_cast %108 : vector<2x128xf32> to vector<1x1x2x128xf32>
    tpu.vector_store %arg7[%c0_84, %c4_85, %c0_86, %c0_87], %111 {strides = array<i32>} : memref<1x5x2x128xf32, #tpu.memory_space<vmem>>, vector<1x1x2x128xf32>,
    return
  }
  func.func @transform_0(%arg0: i32, %arg1: i32) -> (i32, i32, i32) {
    %c0_i32 = arith.constant 0 : i32
    %c0_i32_0 = arith.constant 0 : i32
    return %arg0, %arg1, %c0_i32 : i32, i32, i32
  }
  func.func @transform_1(%arg0: i32, %arg1: i32) -> (i32, i32, i32) {
    %c0_i32 = arith.constant 0 : i32
    %c0_i32_0 = arith.constant 0 : i32
    return %arg0, %arg1, %c0_i32 : i32, i32, i32
  }
  func.func @transform_2(%arg0: i32, %arg1: i32) -> (i32, i32, i32) {
    %c0_i32 = arith.constant 0 : i32
    %c0_i32_0 = arith.constant 0 : i32
    return %arg0, %arg1, %c0_i32 : i32, i32, i32
  }
  func.func @transform_3(%arg0: i32, %arg1: i32) -> (i32, i32, i32) {
    %c0_i32 = arith.constant 0 : i32
    %c0_i32_0 = arith.constant 0 : i32
    return %arg0, %arg1, %c0_i32 : i32, i32, i32
  }
  func.func @transform_4(%arg0: i32, %arg1: i32) -> (i32, i32, i32) {
    %c0_i32 = arith.constant 0 : i32
    %c0_i32_0 = arith.constant 0 : i32
    return %arg0, %arg1, %c0_i32 : i32, i32, i32
  }
  func.func @transform_5(%arg0: i32, %arg1: i32) -> (i32, i32, i32, i32) {
    %c0_i32 = arith.constant 0 : i32
    %c0_i32_0 = arith.constant 0 : i32
    %c0_i32_1 = arith.constant 0 : i32
    %c0_i32_2 = arith.constant 0 : i32
    return %arg0, %c0_i32, %c0_i32_0, %c0_i32_1 : i32, i32, i32, i32
  }
}

</mosaic_0001>

<bundles_post_ra>
// kernel: east_loss_pallas.1
= control target key start
LH: loop header
LB: loop body
LE: loop exit
PB: predicated region body
PF: predicated region fallthrough
CT: control target
= control target key end

     0   :  { %s872_s18 = smov 0   ;;  %s874_s19 = smov 0   ;;  %s988_s0 = inlined_call_operand.vmem [shape: f32[2,2,128], index: 0, kind: input, shape index: {}]   ;;  %s989_s1 = inlined_call_operand.vmem [shape: f32[2,2,128], index: 1, kind: input, shape index: {}]   ;;  %s990_s2 = inlined_call_operand.vmem [shape: f32[2,2,128], index: 2, kind: input, shape index: {}]   ;;  %s991_s3 = inlined_call_operand.vmem [shape: f32[10,2,128], index: 3, kind: input, shape index: {}]   ;;  %s992_s4 = inlined_call_operand.vmem [shape: f32[10,2,128], index: 4, kind: input, shape index: {}]   ;;  %s993_s5 = inlined_call_operand.vmem [shape: f32[2,5,2,128], index: 5, kind: output, shape index: {}]  }
   0x1   :  { %s876_s20 = smov 0  }
   0x2 LB: > { %s27_s21 = sadd.s32 1, %s828_s19  ;;  %p741_p0 = scmp.ge.s32.totalorder %s832_s20, 1  ;;  %s832_s20 = sphi %s876_s20, %s15_s20   ;;  %s828_s19 = sphi %s874_s19, %s997_s19   ;;  %s824_s18 = sphi %s872_s18, %s996_s18  }
   0x3   : > { %p29_p1 = scmp.ge.s32.totalorder %s27_s21, 2  ;;  %p263_p2 = scmp.lt.s32.totalorder %s832_s20, 3 }
   0x5   : > { %s999_s21 = smov (%p29_p1, %s27_s21), 0  ;;  %p264_p3 = pnand %p741_p0, %p263_p2 }
   0x6   : > { %p323_p4 = scmp.lt.s32.totalorder (!%p264_p3), %s824_s18, 1  ;;  %s344_s22 = smul.u32 (!%p264_p3), 5, %s824_s18 }
   0x7   : > { %267 = sbr.rel (%p264_p3) target bundleno = 129 (0x81), region = 40 }
   0x8   : > { %p345_p5 = scmp.lt.s32.totalorder (!%p264_p3), %s344_s22, 9 }
   0xc   : > { %s1001_s18 = smov (!%p323_p4, %s824_s18), 1  ;;  %v834_v0 = vmov 0.0   ;;  %s1003_s22 = smov (!%p345_p5, %s344_s22), 9  ;;  %v835_v61 = vmov 683565275  }
   0xd   : > { %s769_s23 = smul.u32 10, %s1001_s18  ;;  %s742_s24 = sshll.u32 %s1001_s18, 1  ;;  %v836_v63 = vmov 2475754826  }
   0xe   : > { %s336_s27 = scalar_lea.vmem %s989_s1, %s742_s24  ;;  %s343_s8 = scalar_lea.vmem %s990_s2, %s742_s24 }
   0xf   : > { %s896_s30 = scalar_lea.vmem %s993_s5, %s769_s23  ;;  %v377_v1 = vld [vmem:[%s336_s27] sm:$0x3]  ;;  %s329_s11 = scalar_lea.vmem %s988_s0, %s742_s24 }
  0x10   : > { %371 = vst [vmem:[%s896_s30] sm:$0x3] %v834_v0  ;;  %v378_v2 = vld [vmem:[%s343_s8] sm:$0x3]  ;;  %s745_s12 = sshll.u32 %s1003_s22, 1 }
  0x11   : > { %372 = vst [vmem:[%s896_s30 + $0x2] sm:$0x3] %v834_v0  ;;  %v379_v3 = vsub.f32 1.0, %v378_v2  ;;  %s351_s15 = scalar_lea.vmem %s991_s3, %s745_s12  ;;  %v376_v7 = vld [vmem:[%s329_s11] sm:$0x3]  ;;  %s360_s18 = scalar_lea.vmem %s992_s4, %s745_s12 }
  0x12   : > { %373 = vst [vmem:[%s896_s30 + $0x4] sm:$0x3] %v834_v0  ;;  %v381_v5 = vld [vmem:[%s351_s15] sm:$0x3]  ;;  %v748_v6 = vld [vmem:[%s351_s15 + $0x2] sm:$0x3] }
  0x13   : > { %374 = vst [vmem:[%s896_s30 + $0x6] sm:$0x3] %v834_v0  ;;  %v380_v4 = vmul.f32 %v379_v3, %v377_v1  ;;  %v749_v10 = vld [vmem:[%s351_s15 + $0x4] sm:$0x3]  ;;  %v409_v11 = vadd.f32 %v748_v6, %v381_v5  ;;  %v750_v12 = vld [vmem:[%s351_s15 + $0x6] sm:$0x3] }
  0x14   : > { %375 = vst [vmem:[%s896_s30 + $0x8] sm:$0x3] %v834_v0  ;;  %v390_v13 = vld [vmem:[%s360_s18] sm:$0x3]  ;;  %v752_v14 = vld [vmem:[%s360_s18 + $0x2] sm:$0x3]  ;;  %v410_v18 = vadd.f32 %v750_v12, %v749_v10 }
  0x15   : > { %v399_v8 = vadd.f32 1e-08, %v380_v4  ;;  %v404_v9 = vsub.f32 1.0, %v380_v4  ;;  %v753_v17 = vld [vmem:[%s360_s18 + $0x4] sm:$0x3]  ;;  %v412_v19 = vadd.f32 %v752_v14, %v390_v13  ;;  %v418_v23 = vmin.f32 %v381_v5, %v390_v13 }
  0x16   : > { %v754_v21 = vld [vmem:[%s360_s18 + $0x6] sm:$0x3]  ;;  %v415_v22 = vmin.f32 %v749_v10, %v753_v17  ;;  %v419_v24 = vmin.f32 %v748_v6, %v752_v14  ;;  %v751_v25 = vld [vmem:[%s351_s15 + $0x8] sm:$0x3]  ;;  %v411_v26 = vmul.f32 %v410_v18, %v409_v11  ;;  %v403_v39 = vsub.f32 1.0, %v376_v7 }
  0x17   : > { %v588_v15 = vld [vmem:[%s896_s30] sm:$0x3]  ;;  %802 = vlog2.f32 %v399_v8  ;;  %v405_v16 = vadd.f32 1e-08, %v404_v9  ;;  %v413_v27 = vadd.f32 %v754_v21, %v753_v17  ;;  %v416_v28 = vmin.f32 %v750_v12, %v754_v21  ;;  %v755_v29 = vld [vmem:[%s360_s18 + $0x8] sm:$0x3] }
  0x18   : > { %v589_v20 = vadd.f32 %v588_v15, %v376_v7  ;;  %v420_v30 = vadd.f32 %v419_v24, %v418_v23  ;;  %v917_v31 = vsub.f32 %v755_v29, %v751_v25  ;;  %v759_v43 = vld [vmem:[%s896_s30 + $0x2] sm:$0x3]  ;;  %v837_v2 = vmov 2131351028  }
  0x19   : > { %804 = vlog2.f32 %v405_v16  ;;  %v414_v32 = vmul.f32 %v413_v27, %v412_v19  ;;  %v417_v33 = vadd.f32 %v416_v28, %v415_v22  ;;  %v761_v48 = vld [vmem:[%s896_s30 + $0x4] sm:$0x3]  ;;  %v838_v4 = vmov 2102212464  }
  0x1a   : > { %590 = vst [vmem:[%s896_s30] sm:$0x3] %v589_v20  ;;  %v435_v34 = vand.u32 2139095040, %v917_v31  ;;  %v432_v40 = vand.u32 2147483647, %v917_v31  ;;  %v839_v6 = vmov 920167782  }
  0x1b   : > { %v421_v36 = vmul.f32 %v420_v30, %v417_v33  ;;  %v422_v37 = vadd.f32 %v414_v32, %v411_v26  ;;  %v840_v14 = vmov 1326507024   ;;  %vm434_vm12 = vcmp.lt.s32.totalorder %v917_v31, 0 }
  0x1c   : > { %v436_v41 = vshrl.u32 %v435_v34, 23  ;;  %v439_v52 = vand.u32 8388607, %v432_v40  ;;  %vm967_vm13 = vcmp.le.f32.partialorder %v432_v40, 0.7853982 }
  0x1d   : > { %v803_v35 = vpop.eup %802  ;;  %v423_v44 = vsub.f32 %v422_v37, %v421_v36  ;;  %v424_v56 = vadd.f32 1.0, %v421_v36 }
  0x1e   : > { %v401_v38 = vmul.f32 0.6931472, %v803_v35  ;;  %v756_v47 = vadd.s32 4294967169, %v436_v41  ;;  %v440_v57 = vor.u32 8388608, %v439_v52 }
  0x1f   : > { %v805_v42 = vpop.eup %804  ;;  %v425_v49 = vadd.f32 1.0, %v423_v44 }
  0x20   : > { %v402_v45 = vmul.f32 %v401_v38, %v376_v7  ;;  %v407_v46 = vmul.f32 0.6931472, %v805_v42  ;;  %v442_v53 = vadd.s32 1, %v756_v47  ;;  %v929_v11 = vshll.u32 %v440_v57, 8  ;;  %v763_v38 = vld [vmem:[%s896_s30 + $0x6] sm:$0x3] }
  0x21   : > { %806 = vrcp.f32 %v425_v49 }
  0x22   : > { %v594_v50 = vadd.f32 %v759_v43, %v402_v45  ;;  %v408_v51 = vmul.f32 %v407_v46, %v403_v39  ;;  %vm443_vm0 = vcmp.gt.s32.totalorder %v442_v53, 0  ;;  %v481_v27 = vand.u32 65535, %v929_v11 }
  0x23   : > { %v444_v55 = vsel %vm443_vm0, %v442_v53, 0  ;;  %v482_v28 = vshrl.u32 %v929_v11, 16 }
  0x24   : > { %760 = vst [vmem:[%s896_s30 + $0x2] sm:$0x3] %v594_v50  ;;  %v599_v54 = vadd.f32 %v761_v48, %v408_v51  ;;  %v446_v58 = vand.u32 31, %v444_v55  ;;  %v927_v59 = vshrl.u32 %v444_v55, 5 }
  0x26   : > { %762 = vst [vmem:[%s896_s30 + $0x4] sm:$0x3] %v599_v54  ;;  %v447_v60 = vsub.s32 32, %v446_v58  ;;  %v449_v62 = vshll.u32 %v835_v61, %v446_v58  ;;  %v452_v0 = vshll.u32 %v836_v63, %v446_v58  ;;  %v455_v3 = vshll.u32 %v837_v2, %v446_v58 }
  0x27   : > { %v807_v1 = vpop.eup %806  ;;  %v458_v5 = vshll.u32 %v838_v4, %v446_v58  ;;  %v461_v7 = vshll.u32 %v839_v6, %v446_v58  ;;  %vm464_vm1 = vcmp.lt.s32.totalorder %v927_v59, 1  ;;  %vm467_vm2 = vcmp.lt.s32.totalorder %v927_v59, 4 }
  0x28   : > { %v427_v8 = vmul.f32 %v807_v1, %v424_v56  ;;  %v450_v9 = vshrl.u32 %v836_v63, %v447_v60  ;;  %v453_v10 = vshrl.u32 %v837_v2, %v447_v60  ;;  %v456_v12 = vshrl.u32 %v838_v4, %v447_v60 }
  0x29   : > { %v459_v13 = vshrl.u32 %v839_v6, %v447_v60  ;;  %v462_v15 = vshrl.u32 %v840_v14, %v447_v60  ;;  %vm466_vm3 = vcmp.lt.s32.totalorder %v927_v59, 3  ;;  %vm465_vm4 = vcmp.lt.s32.totalorder %v927_v59, 2 }
  0x2a   : > { %808 = vlog2.f32 %v427_v8  ;;  %v451_v16 = vor.u32 %v450_v9, %v449_v62  ;;  %v454_v17 = vor.u32 %v453_v10, %v452_v0  ;;  %v457_v18 = vor.u32 %v456_v12, %v455_v3 }
  0x2b   : > { %v460_v19 = vor.u32 %v459_v13, %v458_v5  ;;  %v463_v20 = vor.u32 %v462_v15, %v461_v7  ;;  %v448_v39 = vshrl.u32 %v835_v61, %v447_v60  ;;  %v841_v58 = vmov 0  }
  0x2c   : > { %v472_v21 = vsel %vm464_vm1, %v451_v16, %v454_v17  ;;  %v476_v23 = vsel %vm464_vm1, %v454_v17, %v457_v18  ;;  %v469_v57 = vsel %vm467_vm2, %v457_v18, 2102212464 }
  0x2d   : > { %v473_v22 = vsel %vm467_vm2, %v460_v19, 920167782  ;;  %v477_v24 = vsel %vm467_vm2, %v463_v20, 1326507024  ;;  %v468_v54 = vsel %vm464_vm1, %v448_v39, %v451_v16  ;;  %v470_v4 = vsel %vm466_vm3, %v454_v17, %v469_v57 }
  0x2e   : > { %v474_v25 = vsel %vm466_vm3, %v457_v18, %v473_v22  ;;  %v478_v26 = vsel %vm466_vm3, %v460_v19, %v477_v24  ;;  %v471_v13 = vsel %vm465_vm4, %v468_v54, %v470_v4  ;;  %vm575_vm1 = vweird.f32 %v917_v31 }
  0x2f   : > { %v475_v29 = vsel %vm465_vm4, %v472_v21, %v474_v25  ;;  %v479_v30 = vsel %vm465_vm4, %v476_v23, %v478_v26  ;;  %v525_v18 = vmul.u32 %v929_v11, %v471_v13 }
  0x30   : > { %v809_v32 = vpop.eup %808  ;;  %v483_v33 = vand.u32 65535, %v479_v30  ;;  %v484_v34 = vshrl.u32 %v479_v30, 16  ;;  %v505_v35 = vand.u32 65535, %v475_v29  ;;  %v506_v36 = vshrl.u32 %v475_v29, 16 }
  0x31   : > { %v429_v37 = vmul.f32 0.6931472, %v809_v32 }
  0x32   : > { %v485_v41 = vmul.u32 %v483_v33, %v481_v27  ;;  %v486_v42 = vmul.u32 %v484_v34, %v481_v27  ;;  %v487_v43 = vmul.u32 %v483_v33, %v482_v28  ;;  %v507_v45 = vmul.u32 %v505_v35, %v481_v27 }
  0x33   : > { %v430_v44 = vsub.f32 0.0, %v429_v37  ;;  %v508_v46 = vmul.u32 %v506_v36, %v481_v27  ;;  %v509_v47 = vmul.u32 %v505_v35, %v482_v28  ;;  %v488_v48 = vmul.u32 %v484_v34, %v482_v28 }
  0x34   : > { %v489_v49 = vshll.u32 %v486_v42, 16  ;;  %v491_v50 = vshll.u32 %v487_v43, 16  ;;  %v510_v52 = vmul.u32 %v506_v36, %v482_v28  ;;  %v490_v62 = vshrl.u32 %v486_v42, 16 }
  0x35   : > { %v604_v51 = vadd.f32 %v763_v38, %v430_v44  ;;  %v511_v53 = vshll.u32 %v508_v46, 16  ;;  %v513_v56 = vshll.u32 %v509_v47, 16  ;;  %v512_v2 = vshrl.u32 %v508_v46, 16 }
  0x36   : > { %vm493_vm5 = vc.u32 %v485_v41, %v489_v49  ;;  %v495_v55 = vadd.s32 %v489_v49, %v485_v41  ;;  %v492_v5 = vshrl.u32 %v487_v43, 16  ;;  %v514_v8 = vshrl.u32 %v509_v47, 16 }
  0x37   : > { %764 = vst [vmem:[%s896_s30 + $0x6] sm:$0x3] %v604_v51  ;;  %v494_v60 = vsel %vm493_vm5, 1, %v841_v58  ;;  %vm515_vm6 = vc.u32 %v507_v45, %v511_v53  ;;  %v517_v61 = vadd.s32 %v511_v53, %v507_v45 }
  0x38   : > { %v496_v63 = vadd.s32 %v494_v60, %v488_v48  ;;  %vm497_vm7 = vc.u32 %v495_v55, %v491_v50  ;;  %v516_v0 = vsel %vm515_vm6, 1, %v841_v58 }
  0x39   : > { %v498_v1 = vsel %vm497_vm7, 1, %v841_v58  ;;  %v518_v3 = vadd.s32 %v516_v0, %v510_v52  ;;  %vm519_vm8 = vc.u32 %v517_v61, %v513_v56  ;;  %v521_v12 = vadd.s32 %v517_v61, %v513_v56 }
  0x3a   : > { %v500_v6 = vadd.s32 %v498_v1, %v496_v63  ;;  %v520_v7 = vsel %vm519_vm8, 1, %v841_v58 }
  0x3b   : > { %v522_v9 = vadd.s32 %v520_v7, %v518_v3 }
  0x3c   : > { %v501_v10 = vadd.s32 %v500_v6, %v490_v62  ;;  %v765_v6 = vld [vmem:[%s896_s30 + $0x8] sm:$0x3] }
  0x3d   : > { %v523_v14 = vadd.s32 %v522_v9, %v512_v2 }
  0x3e   : > { %v502_v15 = vadd.s32 %v501_v10, %v492_v5 }
  0x3f   : > { %v524_v16 = vadd.s32 %v523_v14, %v514_v8 }
  0x40   : > { %vm527_vm9 = vc.u32 %v502_v15, %v521_v12  ;;  %v526_v59 = vadd.s32 %v521_v12, %v502_v15 }
  0x41   : > { %v528_v19 = vadd.s32 1, %v524_v16 }
  0x43   : > { %v529_v20 = vsel %vm527_vm9, %v528_v19, %v524_v16 }
  0x44   : > { %v530_v21 = vadd.s32 %v529_v20, %v525_v18 }
  0x46   : > { %v531_v17 = vadd.s32 536870912, %v530_v21 }
  0x48   : > { %v532_v22 = vshrl.u32 %v531_v17, 30 }
  0x4a   : > { %v533_v23 = vshll.u32 %v532_v22, 30  ;;  %v556_v45 = vsub.s32 4, %v532_v22 }
  0x4c   : > { %v534_v24 = vsub.s32 %v530_v21, %v533_v23  ;;  %v557_v50 = vsel %vm434_vm12, %v556_v45, %v532_v22 }
  0x4d   : > { %v559_v53 = vsel %vm967_vm13, 0, %v557_v50 }
  0x4e   : > { %vm535_vm10 = vcmp.lt.s32.totalorder %v534_v24, 0  ;;  %v536_v25 = vsub.s32 0, %v534_v24  ;;  %v576_v57 = vand.u32 3, %v559_v53 }
  0x50   : > { %v537_v26 = vsel %vm535_vm10, %v536_v25, %v534_v24  ;;  %vm581_vm14 = vcmp.eq.s32.totalorder %v576_v57, 2  ;;  %vm578_vm15 = vcmp.eq.s32.totalorder %v576_v57, 0  ;;  %vm577_vm0 = vcmp.lt.s32.totalorder %v576_v57, 2 }
  0x51   : > { %v538_v27 = vclz %v537_v26 }
  0x53   : > { %v757_v28 = vadd.s32 4294967294, %v538_v27 }
  0x55   : > { %vm758_vm11 = vcmp.lt.s32.totalorder %v757_v28, 0 }
  0x56   : > { %v541_v29 = vsel %vm758_vm11, 0, %v757_v28 }
  0x57   : > { %v542_v30 = vsub.s32 32, %v541_v29  ;;  %v543_v32 = vshll.u32 %v534_v24, %v541_v29  ;;  %v546_v33 = vsub.s32 4294967266, %v541_v29 }
  0x59   : > { %v544_v11 = vshrl.u32 %v526_v59, %v542_v30  ;;  %v547_v34 = vadd.s32 127, %v546_v33 }
  0x5b   : > { %v545_v35 = vor.u32 %v544_v11, %v543_v32  ;;  %v548_v36 = vshll.u32 %v547_v34, 23 }
  0x5d   : > { %v549_v37 = vor.u32 4788187, %v548_v36  ;;  %v552_v38 = vcvt.s32.f32 %v545_v35 }
  0x5f   : > { %v550_v39 = vand.u32 2147483647, %v549_v37 }
  0x61   : > { %v553_v41 = vmul.f32 %v552_v38, %v550_v39 }
  0x63   : > { %v554_v43 = vxor.u32 2147483648, %v553_v41 }
  0x65   : > { %v555_v44 = vsel %vm434_vm12, %v554_v43, %v553_v41 }
  0x66   : > { %v558_v46 = vsel %vm967_vm13, %v917_v31, %v555_v44 }
  0x67   : > { %v560_v47 = vmul.f32 %v558_v46, %v558_v46 }
  0x69   : > { %v561_v48 = vmul.f32 -0.001358992, %v560_v47  ;;  %v568_v49 = vmul.f32 -0.00019511016, %v560_v47 }
  0x6b   : > { %v562_v51 = vadd.f32 0.041655596, %v561_v48  ;;  %v569_v52 = vadd.f32 0.008332121, %v568_v49 }
  0x6d   : > { %v563_v40 = vmul.f32 %v562_v51, %v560_v47  ;;  %v570_v54 = vmul.f32 %v569_v52, %v560_v47 }
  0x6f   : > { %v564_v55 = vadd.f32 -0.4999988, %v563_v40  ;;  %v571_v56 = vadd.f32 -0.16666654, %v570_v54 }
  0x71   : > { %v565_v58 = vmul.f32 %v564_v55, %v560_v47  ;;  %v572_v60 = vmul.f32 %v571_v56, %v560_v47 }
  0x73   : > { %v566_v61 = vadd.f32 1.0, %v565_v58  ;;  %v573_v62 = vadd.f32 1.0, %v572_v60 }
  0x75   : > { %v574_v63 = vmul.f32 %v573_v62, %v558_v46  ;;  %v582_v0 = vxor.u32 2147483648, %v566_v61 }
  0x77   : > { %v579_v1 = vxor.u32 2147483648, %v574_v63  ;;  %v583_v2 = vsel %vm581_vm14, %v582_v0, %v574_v63 }
  0x79   : > { %v580_v3 = vsel %vm578_vm15, %v566_v61, %v579_v1 }
  0x7a   : > { %v584_v4 = vsel %vm577_vm0, %v580_v3, %v583_v2 }
  0x7b   : > { %v585_v5 = vsel %vm575_vm1, nan, %v584_v4 }
  0x7c   : > { %v586_v7 = vsub.f32 1.0, %v585_v5 }
  0x7e   : > { %v609_v8 = vadd.f32 %v765_v6, %v586_v7 }
  0x80   : > { %766 = vst [vmem:[%s896_s30 + $0x8] sm:$0x3] %v609_v8 }
  0x81 PF: > { %s15_s20 = sadd.s32 1, %s832_s20   ;;  %s996_s18 = smov %s828_s19 }
  0x82   : > { %p12_p6 = scmp.ge.s32.totalorder %s15_s20, 4   ;;  %s997_s19 = smov %s999_s21 }
  0x84   :  { %14 = sbr.rel (!%p12_p6) target bundleno = 2 (0x2), region = 98 }

</bundles_post_ra>
